<compile_context>
chip_gen: v7x
topology: tpu7x:2x2x1
jax: 0.10.0
libtpu: 0.0.40
codegen_flags: <defaults>
</compile_context>

<pallas_src>
import functools

import jax
import jax.numpy as jnp
from jax.experimental import pallas as pl
from jax.experimental.pallas import tpu as pltpu


def _csse_kernel(x_ref, w1t_ref, b1_ref, w2t_ref, b2_ref, wc_ref, bc_ref,
                 o_ref, *, inv_hw):
    """One grid step over a (B_TILE, C, HW) slab (channels-first layout).

    x_ref   : (Bt, C, HW) model dtype   input block (HW un-padded; Mosaic
                                        masks the ragged lane tail)
    w1t/w2t : (C, C) f32                Linear weights pre-transposed (y = x @ W.T)
    b1/b2   : (1, C) f32                Linear biases
    wc      : (C, 1) f32                1x1 conv weight as a column
    bc      : (1, 1) f32  (SMEM)        1x1 conv bias (scalar)
    o_ref   : (Bt, C, HW) model dtype
    """
    x = x_ref[...].astype(jnp.float32)                    # (Bt, C, HW)

    # ---- channel squeeze & excite (computed per batch element) -------------
    mean = jnp.sum(x, axis=2) * inv_hw                    # (Bt, C)
    h = jnp.dot(mean, w1t_ref[...],
                preferred_element_type=jnp.float32) + b1_ref[...]
    h = jnp.maximum(h, 0.0)                               # ReLU
    gate_c = jax.nn.sigmoid(
        jnp.dot(h, w2t_ref[...],
                preferred_element_type=jnp.float32) + b2_ref[...]
    )                                                     # (Bt, C)

    # ---- spatial squeeze & excite: 1x1 conv C->1 + sigmoid ------------------
    # VPU multiply + sublane reduce; avoids a degenerate (1,C)@(C,HW) MXU
    # matvec (compute has large slack in this HBM-bound kernel).
    s_lin = jnp.sum(x * wc_ref[...][None, :, :], axis=1, keepdims=True) \
        + bc_ref[0, 0]                                    # (Bt, 1, HW)
    s = jax.nn.sigmoid(s_lin)

    # ---- fused concurrent gate: x*s + x*c == x * (s + c) --------------------
    o_ref[...] = (x * (s + gate_c[:, :, None])).astype(o_ref.dtype)


def _derive_vmem_limit_bytes():
    cap = None
    try:
        info = pltpu.get_tpu_info()
        cap = getattr(info, "vmem_capacity_bytes", None)
    except Exception:
        cap = None
    if not cap:
        cap = 64 * 1024 * 1024          # conservative: v7x per-TC VMEM
    # ~15% headroom for Mosaic internal scratch; never ask for more than
    # ~100 MiB even on 128 MiB parts.
    return int(min(cap * 0.85, 100 * 1024 * 1024))


def concurrent_squeeze_excite_2d(x, w1, b1, w2, b2, wconv, bconv,
                                 *, block_bytes_budget=None,
                                 vmem_limit_bytes=None,
                                 donate_input=False):
    """x: (N, C, H, W).  Weights follow nn.Linear / 1x1 nn.Conv2d conventions."""
    N, C, H, W = x.shape
    HW = H * W

    if vmem_limit_bytes is None:
        vmem_limit_bytes = _derive_vmem_limit_bytes()
    if block_bytes_budget is None:
        # 2x in + 2x out pipeline blocks + ~2 block-size f32 elementwise
        # temporaries + resident (C,C) weights + headroom  ->  ~1/10 of limit.
        block_bytes_budget = max(1 << 20, vmem_limit_bytes // 10)

    # No pad / slice passes: HBM traffic is exactly N*C*HW in + out.
    x_flat = x.reshape(N, C, HW)

    # Per-sample VMEM footprint uses the (8,128)-padded tile shape (f32 temps
    # dominate the on-chip cost).
    c_pad = -(-C // 8) * 8
    hw_pad = -(-HW // 128) * 128
    per_batch_bytes = c_pad * hw_pad * 4
    bt_cap = max(1, block_bytes_budget // per_batch_bytes)
    # Keep >= 4 grid steps so v7x megacore (2 TCs) and the DMA pipeline always
    # have work to overlap.
    grid_min = 4
    bt_grid_cap = max(1, N // grid_min) if N >= grid_min else 1
    b_tile = max(1, min(bt_cap, bt_grid_cap, N))
    if b_tile >= 8:
        b_tile -= b_tile % 8            # sublane-friendly (Bt, C) gate matmuls
    grid = (pl.cdiv(N, b_tile),)
    # TODO(synk): if a single sample's (C, HW) slab exceeds the block budget
    # (very large C*H*W), switch to a two-phase HW-tiled schedule (phase 0:
    # accumulate per-channel sums over HW tiles on an "arbitrary" axis;
    # phase 1: stream HW tiles applying x*(s+c)).
    # TODO(synk): if the caller already holds channels-last (N, HW, C) data
    # with C % 128 == 0 and small HW, a channels-last kernel variant avoids
    # lane padding entirely; from NCHW the extra transpose HBM passes cost
    # more than they save, so it is not done here.

    # Parameter layouts the kernel expects (f32 compute throughout).
    w1t = jnp.asarray(w1, jnp.float32).T                  # (C, C): mean @ W1.T
    w2t = jnp.asarray(w2, jnp.float32).T
    b1r = jnp.asarray(b1, jnp.float32).reshape(1, C)
    b2r = jnp.asarray(b2, jnp.float32).reshape(1, C)
    wc = jnp.asarray(wconv, jnp.float32).reshape(C, 1)    # (1,C,1,1) -> column
    bc = jnp.asarray(bconv, jnp.float32).reshape(1, 1)    # scalar -> SMEM

    full = lambda shape: pl.BlockSpec(shape, lambda b: tuple(0 for _ in shape))

    out = pl.pallas_call(
        functools.partial(_csse_kernel, inv_hw=1.0 / float(HW)),
        out_shape=jax.ShapeDtypeStruct((N, C, HW), x.dtype),
        grid=grid,
        in_specs=[
            pl.BlockSpec((b_tile, C, HW), lambda b: (b, 0, 0)),    # x
            full((C, C)),                                          # w1.T
            full((1, C)),                                          # b1
            full((C, C)),                                          # w2.T
            full((1, C)),                                          # b2
            full((C, 1)),                                          # wconv
            pl.BlockSpec(memory_space=pltpu.MemorySpace.SMEM),     # bconv
        ],
        out_specs=pl.BlockSpec((b_tile, C, HW), lambda b: (b, 0, 0)),
        compiler_params=pltpu.CompilerParams(
            dimension_semantics=("parallel",),
            vmem_limit_bytes=vmem_limit_bytes,
        ),
        input_output_aliases=({0: 0} if donate_input else {}),
    )(x_flat, w1t, b1r, w2t, b2r, wc, bc)

    return out.reshape(N, C, H, W)


def _reference(x, w1, b1, w2, b2, wconv, bconv):
    # plain-JAX reference matching the PyTorch module semantics (f32 math)
    N, C, H, W = x.shape
    xf = x.astype(jnp.float32)
    # channel branch
    ca = xf.reshape(N, C, H * W).mean(-1)                    # (N, C)
    h = jax.nn.relu(ca @ w1.T + b1)                          # Linear + ReLU
    cs = jax.nn.sigmoid(h @ w2.T + b2)                       # Linear + Sigmoid
    c = xf * cs[:, :, None, None]
    # spatial branch (1x1 conv C->1)
    sm = jnp.einsum("nchw,c->nhw", xf, wconv.reshape(C)) + bconv.reshape(())
    s = xf * jax.nn.sigmoid(sm)[:, None, :, :]
    return s + c


def _make_params(key, C):
    k1, k2, k3, k4, k5, k6 = jax.random.split(key, 6)
    scale = 1.0 / jnp.sqrt(C)
    w1 = jax.random.uniform(k1, (C, C), jnp.float32, -scale, scale)
    b1 = jax.random.uniform(k2, (C,), jnp.float32, -scale, scale)
    w2 = jax.random.uniform(k3, (C, C), jnp.float32, -scale, scale)
    b2 = jax.random.uniform(k4, (C,), jnp.float32, -scale, scale)
    wconv = jax.random.uniform(k5, (1, C, 1, 1), jnp.float32, -scale, scale)
    bconv = jax.random.uniform(k6, (1,), jnp.float32, -scale, scale)
    return w1, b1, w2, b2, wconv, bconv


def _run_case(key, N, C, H, W, dtype, atol, rtol):
    kx, kp = jax.random.split(key)
    x = jax.random.normal(kx, (N, C, H, W), dtype=jnp.float32).astype(dtype)
    params = _make_params(kp, C)
    out = concurrent_squeeze_excite_2d(x, *params)
    out = jax.block_until_ready(out)
    assert out.shape == (N, C, H, W)
    assert out.dtype == dtype
    ref = _reference(x, *params)
    assert jnp.allclose(out.astype(jnp.float32), ref, atol=atol, rtol=rtol), \
        f"mismatch vs reference for shape={(N, C, H, W)} dtype={dtype}"


if __name__ == "__main__":
    k_main, k_ragged, k_bf16 = jax.random.split(jax.random.PRNGKey(0), 3)

    # primary shape implied by the module spec
    _run_case(k_main, 2, 4, 16, 16, jnp.float32, 1e-5, 1e-5)
    # ragged spatial tail (HW % 128 != 0) + cdiv grid with b_tile=1
    _run_case(k_ragged, 3, 8, 5, 7, jnp.float32, 1e-5, 1e-5)
    # bf16 activations carried end-to-end (f32 compute inside the kernel)
    _run_case(k_bf16, 2, 4, 16, 16, jnp.bfloat16, 2e-2, 2e-2)

    print("KERNEL_OK")
</pallas_src>

<mosaic_0001>
module attributes {stable_mosaic.version = 11 : i64} {
  func.func @_csse_kernel(%arg0: i32, %arg1: memref<1x4x256xf32, #tpu.memory_space<vmem>>, %arg2: memref<4x4xf32, #tpu.memory_space<vmem>>, %arg3: memref<1x4xf32, #tpu.memory_space<vmem>>, %arg4: memref<4x4xf32, #tpu.memory_space<vmem>>, %arg5: memref<1x4xf32, #tpu.memory_space<vmem>>, %arg6: memref<4x1xf32, #tpu.memory_space<vmem>>, %arg7: memref<1x1xf32, #tpu.memory_space<smem>>, %arg8: memref<1x4x256xf32, #tpu.memory_space<vmem>>) attributes {dimension_semantics = [#tpu.dimension_semantics<parallel>], iteration_bounds = array<i64: 2>, scalar_prefetch = 0 : i64, scratch_operands = 0 : i64, tpu.core_type = #tpu.core_type<tc>, window_params = [{transform_indices = @transform_0, window_bounds = array<i64: 1, 4, 256>}, {pipeline_mode = #tpu.pipeline_mode<synchronous>, transform_indices = @transform_1, window_bounds = array<i64: 4, 4>}, {pipeline_mode = #tpu.pipeline_mode<synchronous>, transform_indices = @transform_2, window_bounds = array<i64: 1, 4>}, {pipeline_mode = #tpu.pipeline_mode<synchronous>, transform_indices = @transform_3, window_bounds = array<i64: 4, 4>}, {pipeline_mode = #tpu.pipeline_mode<synchronous>, transform_indices = @transform_4, window_bounds = array<i64: 1, 4>}, {pipeline_mode = #tpu.pipeline_mode<synchronous>, transform_indices = @transform_5, window_bounds = array<i64: 4, 1>}, {transform_indices = @transform_6, window_bounds = array<i64: 1, 1>}, {transform_indices = @transform_7, window_bounds = array<i64: 1, 4, 256>}]} {
    %c0 = arith.constant 0 : index
    %c0_0 = arith.constant 0 : index
    %c0_1 = arith.constant 0 : index
    %0 = vector.load %arg1[%c0, %c0_0, %c0_1] : memref<1x4x256xf32, #tpu.memory_space<vmem>>, vector<1x4x256xf32>
    %cst = arith.constant dense<0.000000e+00> : vector<1x4xf32>
    %1 = vector.multi_reduction <add>, %0, %cst [2] : vector<1x4x256xf32> to vector<1x4xf32>
    %cst_2 = arith.constant 3.906250e-03 : f32
    %2 = vector.broadcast %cst_2 : f32 to vector<1x4xf32>
    %3 = arith.mulf %1, %2 : vector<1x4xf32>
    %c0_3 = arith.constant 0 : index
    %c0_4 = arith.constant 0 : index
    %4 = vector.load %arg2[%c0_3, %c0_4] : memref<4x4xf32, #tpu.memory_space<vmem>>, vector<4x4xf32>
    %cst_5 = arith.constant dense<0.000000e+00> : vector<1x4xf32>
    %5 = tpu.matmul %3, %4, %cst_5 {dimension_numbers = #tpu.dot_dimension_numbers<[1], [0], [0], [1], [0, 0, 1, 1], [], []>} : vector<1x4xf32>, vector<4x4xf32>, vector<1x4xf32> -> vector<1x4xf32>
    %c0_6 = arith.constant 0 : index
    %c0_7 = arith.constant 0 : index
    %6 = vector.load %arg3[%c0_6, %c0_7] : memref<1x4xf32, #tpu.memory_space<vmem>>, vector<1x4xf32>
    %7 = arith.addf %5, %6 : vector<1x4xf32>
    %cst_8 = arith.constant 0.000000e+00 : f32
    %8 = vector.broadcast %cst_8 : f32 to vector<1x4xf32>
    %9 = arith.maximumf %7, %8 : vector<1x4xf32>
    %c0_9 = arith.constant 0 : index
    %c0_10 = arith.constant 0 : index
    %10 = vector.load %arg4[%c0_9, %c0_10] : memref<4x4xf32, #tpu.memory_space<vmem>>, vector<4x4xf32>
    %cst_11 = arith.constant dense<0.000000e+00> : vector<1x4xf32>
    %11 = tpu.matmul %9, %10, %cst_11 {dimension_numbers = #tpu.dot_dimension_numbers<[1], [0], [0], [1], [0, 0, 1, 1], [], []>} : vector<1x4xf32>, vector<4x4xf32>, vector<1x4xf32> -> vector<1x4xf32>
    %c0_12 = arith.constant 0 : index
    %c0_13 = arith.constant 0 : index
    %12 = vector.load %arg5[%c0_12, %c0_13] : memref<1x4xf32, #tpu.memory_space<vmem>>, vector<1x4xf32>
    %13 = arith.addf %11, %12 : vector<1x4xf32>
    %14 = arith.negf %13 : vector<1x4xf32>
    %15 = math.exp %14 : vector<1x4xf32>
    %cst_14 = arith.constant 1.000000e+00 : f32
    %16 = vector.broadcast %cst_14 : f32 to vector<1x4xf32>
    %17 = arith.addf %16, %15 : vector<1x4xf32>
    %18 = arith.divf %16, %17 : vector<1x4xf32>
    %c0_15 = arith.constant 0 : index
    %c0_16 = arith.constant 0 : index
    %19 = vector.load %arg6[%c0_15, %c0_16] : memref<4x1xf32, #tpu.memory_space<vmem>>, vector<4x1xf32>
    %20 = vector.shape_cast %19 : vector<4x1xf32> to vector<1x4x1xf32>
    %21 = vector.broadcast %20 : vector<1x4x1xf32> to vector<1x4x256xf32>
    %22 = arith.mulf %0, %21 : vector<1x4x256xf32>
    %cst_17 = arith.constant dense<0.000000e+00> : vector<1x256xf32>
    %23 = vector.multi_reduction <add>, %22, %cst_17 [1] : vector<1x4x256xf32> to vector<1x256xf32>
    %24 = vector.shape_cast %23 : vector<1x256xf32> to vector<1x1x256xf32>
    %c0_18 = arith.constant 0 : index
    %c0_19 = arith.constant 0 : index
    %25 = memref.load %arg7[%c0_18, %c0_19] : memref<1x1xf32, #tpu.memory_space<smem>>
    %26 = vector.broadcast %25 : f32 to vector<1x1x256xf32>
    %27 = arith.addf %24, %26 : vector<1x1x256xf32>
    %28 = arith.negf %27 : vector<1x1x256xf32>
    %29 = math.exp %28 : vector<1x1x256xf32>
    %cst_20 = arith.constant 1.000000e+00 : f32
    %30 = vector.broadcast %cst_20 : f32 to vector<1x1x256xf32>
    %31 = arith.addf %30, %29 : vector<1x1x256xf32>
    %32 = arith.divf %30, %31 : vector<1x1x256xf32>
    %33 = vector.shape_cast %18 : vector<1x4xf32> to vector<1x4x1xf32>
    %34 = vector.broadcast %32 : vector<1x1x256xf32> to vector<1x4x256xf32>
    %35 = vector.broadcast %33 : vector<1x4x1xf32> to vector<1x4x256xf32>
    %36 = arith.addf %34, %35 : vector<1x4x256xf32>
    %37 = arith.mulf %0, %36 : vector<1x4x256xf32>
    %c0_21 = arith.constant 0 : index
    %c0_22 = arith.constant 0 : index
    %c0_23 = arith.constant 0 : index
    %38 = vector.load %arg8[%c0_21, %c0_22, %c0_23] : memref<1x4x256xf32, #tpu.memory_space<vmem>>, vector<1x4x256xf32>
    tpu.vector_store %arg8[%c0_21, %c0_22, %c0_23], %37 {strides = array<i32>} : memref<1x4x256xf32, #tpu.memory_space<vmem>>, vector<1x4x256xf32>,
    return
  }
  func.func @transform_0(%arg0: i32) -> (i32, i32, i32) {
    %c0_i32 = arith.constant 0 : i32
    %c0_i32_0 = arith.constant 0 : i32
    %c0_i32_1 = arith.constant 0 : i32
    return %arg0, %c0_i32, %c0_i32_0 : i32, i32, i32
  }
  func.func @transform_1(%arg0: i32) -> (i32, i32) {
    %c0_i32 = arith.constant 0 : i32
    %c0_i32_0 = arith.constant 0 : i32
    %c0_i32_1 = arith.constant 0 : i32
    return %c0_i32, %c0_i32_0 : i32, i32
  }
  func.func @transform_2(%arg0: i32) -> (i32, i32) {
    %c0_i32 = arith.constant 0 : i32
    %c0_i32_0 = arith.constant 0 : i32
    %c0_i32_1 = arith.constant 0 : i32
    return %c0_i32, %c0_i32_0 : i32, i32
  }
  func.func @transform_3(%arg0: i32) -> (i32, i32) {
    %c0_i32 = arith.constant 0 : i32
    %c0_i32_0 = arith.constant 0 : i32
    %c0_i32_1 = arith.constant 0 : i32
    return %c0_i32, %c0_i32_0 : i32, i32
  }
  func.func @transform_4(%arg0: i32) -> (i32, i32) {
    %c0_i32 = arith.constant 0 : i32
    %c0_i32_0 = arith.constant 0 : i32
    %c0_i32_1 = arith.constant 0 : i32
    return %c0_i32, %c0_i32_0 : i32, i32
  }
  func.func @transform_5(%arg0: i32) -> (i32, i32) {
    %c0_i32 = arith.constant 0 : i32
    %c0_i32_0 = arith.constant 0 : i32
    %c0_i32_1 = arith.constant 0 : i32
    return %c0_i32, %c0_i32_0 : i32, i32
  }
  func.func @transform_6(%arg0: i32) -> (i32, i32) {
    %c0_i32 = arith.constant 0 : i32
    %c0_i32_0 = arith.constant 0 : i32
    %c0_i32_1 = arith.constant 0 : i32
    return %c0_i32, %c0_i32_0 : i32, i32
  }
  func.func @transform_7(%arg0: i32) -> (i32, i32, i32) {
    %c0_i32 = arith.constant 0 : i32
    %c0_i32_0 = arith.constant 0 : i32
    %c0_i32_1 = arith.constant 0 : i32
    return %arg0, %c0_i32, %c0_i32_0 : i32, i32, i32
  }
}

</mosaic_0001>

<bundles_post_ra>
// kernel: tpu_custom_call.1
= control target key start
LH: loop header
LB: loop body
LE: loop exit
PB: predicated region body
PF: predicated region fallthrough
CT: control target
= control target key end

     0   :  { %s1065_s0 = inlined_call_operand.hbm [shape: f32[2,4,256], index: 0, kind: input, shape index: {}]   ;;  %s1066_s1 = inlined_call_operand.vmem [shape: f32[4,4], index: 1, kind: input, shape index: {}]   ;;  %s1067_s2 = inlined_call_operand.vmem [shape: f32[1,4], index: 2, kind: input, shape index: {}]   ;;  %s1068_s3 = inlined_call_operand.vmem [shape: f32[4,4], index: 3, kind: input, shape index: {}]   ;;  %s1069_s4 = inlined_call_operand.vmem [shape: f32[1,4], index: 4, kind: input, shape index: {}]   ;;  %s1070_s5 = inlined_call_operand.vmem [shape: f32[4,1], index: 5, kind: input, shape index: {}]   ;;  %s1071_s6 = inlined_call_operand.<no memory space> [shape: f32[1,1], index: 6, kind: input, shape index: {}]   ;;  %s1072_s7 = inlined_call_operand.hbm [shape: f32[2,4,256], index: 7, kind: output, shape index: {}]  }
   0x1   :  { %12 = sst [smem:[#allocation2]] %s1071_s6 }
   0x2   :  { %13 = vsyncpa [#allocation4], 0 }
   0x3   :  { %15 = vsyncpa [#allocation4 + $0x1], 0 }
   0x4   :  { %16 = vsyncpa [#allocation5], 0 }
   0x5   :  { %18 = vsyncpa [#allocation5 + $0x1], 0  ;;  %s872_s26 = smov 0   ;;  %s874_s27 = smov 0  }
   0x6   :  { %s876_s28 = smov 0   ;;  %s878_s29 = smov 0  }
   0x7 LB: > { %s893_s6 = sadd.s32 4294967295, %s821_s29   ;;  %s624_s30 = sadd.s32 4294967294, %s821_s29   ;;  %s821_s29 = sphi %s878_s29, %s1087_s29   ;;  %s817_s28 = sphi %s876_s28, %s1086_s28   ;;  %s813_s27 = sphi %s874_s27, %s1085_s27   ;;  %s809_s26 = sphi %s872_s26, %s1084_s26  }
   0x8   : > { %s897_s8 = sadd.s32 1, %s821_s29   ;;  %s31_s9 = sadd.s32 1, %s817_s28 }
   0x9   : > { %s28_s10 = ssub.s32 %s821_s29, %s897_s8  ;;  %p38_p0 = scmp.ne.s32.totalorder %s817_s28, %s813_s27 }
   0xa   : > { %p29_p1 = scmp.eq.s32.totalorder %s28_s10, 0  ;;  %p39_p2 = scmp.eq.s32.totalorder %s821_s29, 0 }
   0xb   : > { %p44_p3 = scmp.ne.s32.totalorder %s813_s27, %s809_s26  ;;  %p45_p4 = scmp.eq.s32.totalorder %s893_s6, 0 }
   0xc   : > { %s909_s11 = scalar_select %p29_p1, %s817_s28, %s31_s9  }
   0xd   : > { %p911_p5 = por %p39_p2, %p38_p0  ;;  %p915_p6 = por %p45_p4, %p44_p3 }
   0xe   : > { %p194_p7 = scmp.eq.s32.totalorder %s893_s6, 1  ;;  %p200_p8 = scmp.eq.s32.totalorder %s624_s30, 1 }
   0xf   : > { %p673_p10 = scmp.lt.s32.totalorder %s821_s29, 2  ;;  %s238_s16 = sand.u32 1, %s817_s28  }
  0x10   : > { %p922_p11 = por %p194_p7, %p38_p0  ;;  %p926_p12 = por %p200_p8, %p44_p3 }
  0x11   : > { %s645_s17 = sshll.u32 %s821_s29, 7  ;;  %s627_s18 = sshll.u32 %s238_s16, 3 }
  0x12   : > { %s1076_s14 = scalar_select %p922_p11, 1, 0 }
  0x13   : > { %s1077_s15 = scalar_select %p926_p12, 1, 0 }
  0x14   : > { %s935_s21 = scalar_lea.hbm %s1065_s0, %s645_s17  ;;  %s242_s22 = scalar_lea.vmem [#allocation3], %s627_s18 }
  0x15   : > { %s250_s23 = sshll.u32 %s242_s22, 4  ;;  %p939_p13 = pnand %p673_p10, %p911_p5  ;;  %s943_s23 = int_to_ptr.vmem [resolvable:$true] %s250_s23 }
  0x16   : > { %s239_s25 = scalar_lea.sflag [#allocation4], %s238_s16  ;;  %s725_s30 = scalar_lea.hbm %s935_s21, 128 }
  0x17   : > { %p726_p2 = scmp.ne.s32.totalorder %s935_s21, %s725_s30  ;;  %p727_p3 = pneg %p939_p13 }
  0x18   : > { %s730_s12 = scalar_lea.hbm %s1065_s0, 256  ;;  %p731_p5 = scmp.lt.u32.totalorder %s935_s21, %s1065_s0 }
  0x19   : > { %p728_p4 = pnand %p727_p3, %p726_p2  ;;  %p732_p8 = scmp.lt.u32.totalorder %s730_s12, %s725_s30 }
  0x1a   : > { %p734_p9 = scmp.lt.u32.totalorder %s725_s30, %s935_s21 }
  0x1b   : > { %p729_p7 = pneg %p728_p4  ;;  %p733_p10 = por %p732_p8, %p731_p5 }
  0x1d   : > { %p735_p0 = por %p734_p9, %p733_p10 }
  0x1f   : > { %p736_p1 = pnand %p735_p0, %p729_p7 }
  0x21   : > { %739 = shalt.err (!%p736_p1)
}
  0x22   : > { %s740_s16 = scalar_lea.vmem %s943_s23, 128  ;;  %s823_s19 = smov [#allocation3]  }
  0x23   : > { %p741_p2 = scmp.ne.s32.totalorder %s943_s23, %s740_s16  ;;  %s745_s20 = sshll.u32 %s823_s19, 4  ;;  %s746_s20 = int_to_ptr.vmem [resolvable:$false] %s745_s20 }
  0x24   : > { %s747_s22 = scalar_lea.vmem %s746_s20, 256  ;;  %p748_p11 = scmp.lt.s32.totalorder %s943_s23, %s746_s20 }
  0x25   : > { %p743_p4 = pnand %p741_p2, %p727_p3  ;;  %p749_p5 = scmp.lt.s32.totalorder %s747_s22, %s740_s16 }
  0x27   : > { %p744_p12 = pneg %p743_p4  ;;  %p750_p8 = por %p749_p5, %p748_p11 }
  0x29   : > { %p751_p9 = pnand %p750_p8, %p744_p12 }
  0x2b   : > { %754 = shalt.err (!%p751_p9)
}
  0x2c   : > { %668 = dma.hbm_to_vmem [thread:$0]  (!%p939_p13), %s935_s21, 128, %s943_s23, %s239_s25  }
  0x2d   : > { %p1079_p0 = scmp.lt.s32.totalorder %s821_s29, 3  ;;  %p1080_p1 = scmp.ge.s32.totalorder %s821_s29, 1 }
  0x2f   : > { %p256_p3 = pnand %p1080_p1, %p1079_p0 }
  0x30   : > { %s977_s30 = sand.u32 (!%p256_p3), 1, %s813_s27  }
  0x31   : > { %259 = sbr.rel (%p256_p3) target bundleno = 802 (0x322), region = 48  ;;  %s631_s9 = sshll.u32 (!%p256_p3), %s977_s30, 3 }
  0x32   : > { %s262_s10 = scalar_lea.sflag (!%p256_p3), [#allocation4], %s977_s30  ;;  %s265_s24 = scalar_lea.vmem (!%p256_p3), [#allocation3], %s631_s9 }
  0x38   : > { %800 = dma.done.wait (%p915_p6), %s262_s10, 128  }
  0x39   : > { %802 = vsyncadd (%p915_p6), %s262_s10, 4294967168  ;;  %vm300_vm0 = vcmask 1043456   ;;  %v987_v0 = vld [vmem:[%s265_s24] sm:$0xff]  ;;  %v824_v5 = vmov 0.0   ;;  %vm825_vm1 = vmmov 0   ;;  %v310_v7 = vlaneseq  ;;  %s508_s22 = sld [smem:[#allocation2]] }
  0x3a   : > { %v298_v1 = vcombine.high %v987_v0, %v987_v0  ;;  %v301_v2 = vsel %vm300_vm0, %v987_v0, 0.0  ;;  %651 = vmatprep.subr.mxu0 %v824_v5  ;;  %v307_v6 = vld [vmem:[%s1066_s1] sm:$0xf]  ;;  %656 = vmatprep.subr.mxu1 %v824_v5  ;;  %vm316_vm2 = vcmask 31744   ;;  %v826_v16 = vmov 0   ;;  %s646_s10 = sshll.u32 %s893_s6, 7 }
  0x3b   : > { %652 = vmatpush3.msk.msra.mxu0 %vm300_vm0, %v307_v6  ;;  %653 = vmatprep.mubr.msk.f32.mxu0 %vm825_vm1, %v824_v5  ;;  %v311_v8 = vand.u32 127, %v310_v7  ;;  %v313_v9 = vshrl.u32 %v310_v7, 7  ;;  %v393_v14 = vld [vmem:[%s1068_s3] sm:$0xf]  ;;  %v827_v32 = vmov 839922192   ;;  %s1021_s25 = scalar_lea.hbm %s1072_s7, %s646_s10 }
  0x3c   : > { %v302_v3 = vsel %vm300_vm0, %v298_v1, 0.0  ;;  %658 = vmatprep.mubr.msk.f32.mxu1 %vm825_vm1, %v824_v5  ;;  %657 = vmatpush3.msk.msra.mxu1 %vm300_vm0, %v393_v14  ;;  %v477_v15 = vld [vmem:[%s1070_s5] sm:$0xf]  ;;  %v483_v33 = vunpack.c.l.s4 %v827_v32  ;;  %s295_s24 = scalar_lea.vmem [#allocation6], %s631_s9  ;;  %s540_s12 = scalar_lea.sflag [#allocation5], %s977_s30 }
  0x3d   : > { %v303_v4 = vadd.f32 %v302_v3, %v301_v2  ;;  %v314_v10 = vsub.s32 %v311_v8, %v313_v9  ;;  %711 = vset.pattern.permute.xlu0 %v826_v16  ;;  %v308_v17 = vld [vmem:[%s1067_s2] sm:$0x1]  ;;  %v526_v29 = vsub.s32 0, %v313_v9  ;;  %s554_s21 = sshll.u32 %s295_s24, 4  ;;  %p1081_p11 = scmp.ne.s32.totalorder %s1076_s14, 0  ;;  %s1023_s21 = int_to_ptr.vmem [resolvable:$true] %s554_s21 }
  0x3e   : > { %v394_v22 = vld [vmem:[%s1069_s4] sm:$0x1]  ;;  %v484_v34 = vunpack.c.0.s8 %v483_v33  ;;  %s755_s17 = scalar_lea.vmem %s1023_s21, 128  ;;  %s828_s6 = smov [#allocation6]  }
  0x3f   : > { %304 = vadd.xlane.f32.xlu0 %v303_v4  ;;  %v509_v53 = vstv %s508_s22  ;;  %p756_p6 = scmp.ne.s32.totalorder %s1023_s21, %s755_s17  ;;  %s759_s9 = sshll.u32 %s828_s6, 4  ;;  %s760_s9 = int_to_ptr.vmem [resolvable:$false] %s759_s9 }
  0x40   : > { %v487_v35 = vsub.s32 %v484_v34, %v313_v9  ;;  %s761_s18 = scalar_lea.vmem %s760_s9, 256  ;;  %p762_p7 = scmp.lt.s32.totalorder %s1023_s21, %s760_s9 }
  0x41   : > { %p757_p12 = pnand %p756_p6, %p1081_p11  ;;  %p763_p10 = scmp.lt.s32.totalorder %s761_s18, %s755_s17 }
  0x43   : > { %p758_p13 = pneg %p757_p12  ;;  %p764_p2 = por %p763_p10, %p762_p7 }
  0x45   : > { %p765_p4 = pnand %p764_p2, %p758_p13 }
  0x55   : > { %480 = vperm.xlu0 %711, %v477_v15  }
  0xcc   : > { %v305_v11 = vpop.xlane.xlu0 %304 }
  0xcd   : > { %v306_v12 = vmul.f32 0.00390625, %v305_v11 }
  0xcf   : > { %v315_v13 = vrot.slane %v306_v12, %v314_v10 }
  0xd1   : > { %654 = vmatmul.mubr.msk.f32.vlgmr.msra.gmra.mrb[0].mxu0 %vm316_vm2, %v315_v13 }
  0xd4   : > { %v481_v36 = vpop.permute.xlu0 %480 }
  0xd5   : > { %v488_v37 = vrot.slane %v481_v36, %v487_v35 }
  0xd7   : > { %v490_v38 = vmul.f32 %v488_v37, %v987_v0 }
  0xd9   : > { %v492_v39 = vcombine.high %v490_v38, %v490_v38  ;;  %v494_v40 = vsel %vm300_vm0, %v490_v38, 0.0 }
  0xda   : > { %v495_v42 = vrot.slane %v494_v40, 4 }
  0xdb   : > { %v501_v41 = vsel %vm300_vm0, %v492_v39, 0.0 }
  0xdc   : > { %v502_v43 = vrot.slane %v501_v41, 4  ;;  %v496_v44 = vadd.f32 %v495_v42, %v494_v40 }
  0xde   : > { %v503_v45 = vadd.f32 %v502_v43, %v501_v41  ;;  %v497_v46 = vrot.slane %v496_v44, 2 }
  0xe0   : > { %v504_v47 = vrot.slane %v503_v45, 2  ;;  %v498_v48 = vadd.f32 %v497_v46, %v496_v44 }
  0xe2   : > { %v505_v49 = vadd.f32 %v504_v47, %v503_v45  ;;  %v499_v50 = vrot.slane %v498_v48, 1 }
  0xe4   : > { %v506_v51 = vrot.slane %v505_v49, 1  ;;  %v500_v52 = vadd.f32 %v499_v50, %v498_v48 }
  0xe6   : > { %v507_v54 = vadd.f32 %v506_v51, %v505_v49  ;;  %v510_v55 = vadd.f32 %v509_v53, %v500_v52 }
  0xe8   : > { %v511_v56 = vadd.f32 %v509_v53, %v507_v54  ;;  %v638_v57 = vmul.f32 -1.442695, %v510_v55 }
  0xea   : > { %v639_v58 = vmul.f32 -1.442695, %v511_v56 }
 0x1a4   : > { %v388_v18 = vpop.f32.mrb[0].mxu0 }
 0x1a5   : > { %v389_v19 = vadd.f32 %v388_v18, %v308_v17  ;;  %v655_v20 = vpop.f32.mrb[1].mxu0 }
 0x1a7   : > { %v392_v21 = vmax.f32 %v389_v19, 0.0 }
 0x1a9   : > { %659 = vmatmul.mubr.msk.f32.vlgmr.msra.gmra.mrb[0].mxu1 %vm316_vm2, %v392_v21 }
 0x27c   : > { %v467_v23 = vpop.f32.mrb[0].mxu1 }
 0x27d   : > { %v468_v24 = vadd.f32 %v467_v23, %v394_v22  ;;  %v660_v25 = vpop.f32.mrb[1].mxu1 }
 0x27f   : > { %v637_v26 = vmul.f32 -1.442695, %v468_v24 }
 0x281   : > { %713 = vpow2.f32 %v637_v26 }
 0x28b   : > { %v714_v27 = vpop.eup %713 }
 0x28c   : > { %v474_v28 = vadd.f32 1.0, %v714_v27 }
 0x28e   : > { %715 = vrcp.f32 %v474_v28 }
 0x28f   : > { %717 = vpow2.f32 %v638_v57 }
 0x290   : > { %719 = vpow2.f32 %v639_v58 }
 0x298   : > { %v716_v30 = vpop.eup %715 }
 0x299   : > { %v527_v31 = vrot.slane %v716_v30, %v526_v29  ;;  %v718_v59 = vpop.eup %717 }
 0x29a   : > { %v720_v60 = vpop.eup %719  ;;  %v518_v61 = vadd.f32 1.0, %v718_v59 }
 0x29b   : > { %529 = vbcast.lane.b32.xlu1 %v527_v31, 256  ;;  %v519_v62 = vadd.f32 1.0, %v720_v60 }
 0x29c   : > { %721 = vrcp.f32 %v518_v61 }
 0x29d   : > { %723 = vrcp.f32 %v519_v62 }
 0x2a6   : > { %v722_v63 = vpop.eup %721 }
 0x2a7   : > { %v724_v1 = vpop.eup %723 }
 0x30d   : > { %v530_v2 = vpop.permute.xlu1 %529 }
 0x30e   : > { %v531_v3 = vadd.f32 %v722_v63, %v530_v2  ;;  %v532_v4 = vadd.f32 %v724_v1, %v530_v2 }
 0x310   : > { %v535_v5 = vcombine.low %v531_v3, %v532_v4 }
 0x312   : > { %v537_v6 = vmul.f32 %v535_v5, %v987_v0 }
 0x314   : > { %538 = vst [vmem:[%s295_s24] sm:$0xff] %v537_v6 }
 0x315   : > { %768 = shalt.err (!%p765_p4)
}
 0x316   : > { %s769_s30 = scalar_lea.hbm %s1021_s25, 128  ;;  %s773_s20 = scalar_lea.hbm %s1072_s7, 256 }
 0x317   : > { %p770_p5 = scmp.ne.s32.totalorder %s1021_s25, %s769_s30  ;;  %p774_p0 = scmp.lt.u32.totalorder %s1021_s25, %s1072_s7 }
 0x318   : > { %p775_p1 = scmp.lt.u32.totalorder %s773_s20, %s769_s30  ;;  %p777_p6 = scmp.lt.u32.totalorder %s769_s30, %s1021_s25 }
 0x319   : > { %p771_p8 = pnand %p770_p5, %p1081_p11 }
 0x31a   : > { %p776_p3 = por %p775_p1, %p774_p0 }
 0x31b   : > { %p772_p9 = pneg %p771_p8 }
 0x31c   : > { %p778_p12 = por %p777_p6, %p776_p3 }
 0x31e   : > { %p779_p13 = pnand %p778_p12, %p772_p9 }
 0x320   : > { %782 = shalt.err (!%p779_p13)
}
 0x321   : > { %663 = dma.vmem_to_hbm [thread:$0]  (%p1081_p11), %s1023_s21, 128, %s1021_s25, %s540_s12  }
 0x322 PF: > { %s566_s24 = sand.u32 1, %s809_s26   ;;  %p1082_p7 = scmp.ne.s32.totalorder %s1077_s15, 0 }
 0x323   : > { %p1083_p10 = scmp.ge.s32.totalorder %s821_s29, 2  ;;  %s567_s23 = scalar_lea.sflag [#allocation5], %s566_s24 }
 0x325   : > { %p670_p2 = pnand %p1083_p10, %p1082_p7 }
 0x327   : > { %804 = dma.done.wait (!%p670_p2), %s567_s23, 128  }
 0x328   : > { %806 = vsyncadd (!%p670_p2), %s567_s23, 4294967168  ;;  %p21_p4 = scmp.ge.s32.totalorder %s897_s8, 4   ;;  %s1084_s26 = smov %s813_s27 }
 0x329   : > { %s1085_s27 = smov %s817_s28  ;;  %s1086_s28 = smov %s909_s11 }
 0x32a   : > { %s1087_s29 = smov %s897_s8  ;;  %23 = sbr.rel (!%p21_p4) target bundleno = 7 (0x7), region = 93 }
 0x331   :  { %572 = vsyncpa [#allocation4], 1 }
 0x332   :  { %574 = vsyncpa [#allocation4 + $0x1], 1 }
 0x333   :  { %575 = vsyncpa [#allocation5], 1 }
 0x334   :  { %577 = vsyncpa [#allocation5 + $0x1], 1 }

</bundles_post_ra>
